<compile_context>
chip_gen: v7x
topology: tpu7x:2x2x1
jax: 0.10.0
libtpu: 0.0.40
codegen_flags: <defaults>
</compile_context>

<pallas_src>
import functools

import jax
import jax.numpy as jnp
from jax.experimental import pallas as pl
from jax.experimental.pallas import tpu as pltpu


# ----------------------------- kernel ---------------------------------------


def _fused_kernel(x_ref, w_ref, o_ref, *, group):
    """One (batch, row-block) tile of fused conv3x3 + PixelUnshuffle(2).

    x_ref: (TH2+1, W2+1, 4*Cin)  parity-concat rows incl. 1 halo row   bf16
    w_ref: (16*Cin, 4*Cout)      folded conv+unshuffle weight          bf16
    o_ref: (1, TH2*W2, 4*Cout)   output tile, final b(hw)c layout      f32
    group: windows folded per dot (1, 2 or 4)
    """
    TH2p1, W2p1, Cin4 = x_ref.shape
    TH2, W2 = TH2p1 - 1, W2p1 - 1
    M = TH2 * W2

    tile = x_ref[...]  # load once; windows below are value slices

    acc = None
    for gi in range(4 // group):
        parts = []
        for s in range(gi * group, (gi + 1) * group):
            sy, sx = divmod(s, 2)
            parts.append(tile[sy:sy + TH2, sx:sx + W2, :])
        slab = parts[0] if group == 1 else jnp.concatenate(parts, axis=-1)
        slab = slab.reshape(M, group * Cin4)            # keeps last (lane) dim
        w_blk = w_ref[gi * group * Cin4:(gi + 1) * group * Cin4, :]
        d = jnp.dot(slab, w_blk, preferred_element_type=jnp.float32)
        acc = d if acc is None else acc + d

    o_ref[...] = acc[None].astype(o_ref.dtype)


# ----------------------------- weight folding -------------------------------


def _build_fused_weight(weight):
    """(Cout, Cin, 3, 3) OIHW conv weight -> (16*Cin, 4*Cout) folded weight.

    Row index = (((sy*2+sx)*2+py)*2+px)*Cin + cin   (shift, parity, cin)
    Col index = c*4 + i*2 + j   (torch PixelUnshuffle(2) order).
    """
    Cout, Cin = weight.shape[0], weight.shape[1]
    w_hwio = jnp.transpose(weight, (2, 3, 1, 0))        # (3, 3, Cin, Cout)
    wb = jnp.zeros((2, 2, 2, 2, Cin, Cout, 2, 2), weight.dtype)
    for sy in range(2):
        for sx in range(2):
            for py in range(2):
                for px in range(2):
                    ky, kx = 2 * sy + py, 2 * sx + px
                    for i in range(2):
                        for j in range(2):
                            a, b = ky - i, kx - j
                            if 0 <= a <= 2 and 0 <= b <= 2:
                                wb = wb.at[sy, sx, py, px, :, :, i, j].set(
                                    w_hwio[a, b])
    return wb.reshape(16 * Cin, 4 * Cout)


# ----------------------------- sizing helpers --------------------------------


def _vmem_limit_bytes():
    cap = 128 * 1024 * 1024
    try:
        info_fn = getattr(pltpu, "get_tpu_info", None)
        if info_fn is not None:
            cap = int(getattr(info_fn(), "vmem_capacity_bytes", cap)) or cap
    except Exception:
        pass
    # v7x (64 MiB/TC): leave double-buffer/scratch headroom; v5e/v6e: use it.
    return 40 * 1024 * 1024 if cap <= 64 * 1024 * 1024 else 96 * 1024 * 1024


def _step_vmem_bytes(TH2, W2, Cin4, C4):
    """Per-grid-step VMEM estimate including (sublane, 128-lane) tile padding."""
    def up(a, m):
        return -(-a // m) * m

    M = TH2 * W2
    in_tile = (TH2 + 1) * up(W2 + 1, 16) * up(Cin4, 128) * 2      # bf16 block
    w_tile = up(4 * Cin4, 16) * up(C4, 128) * 2                   # bf16 weight
    out_tile = up(M, 8) * up(C4, 128) * 4                         # f32 block
    slab = up(M, 16) * 4 * up(Cin4, 128) * 2                      # im2col windows
    acc = up(M, 8) * up(C4, 128) * 4                              # f32 acc
    return (2 * in_tile + in_tile       # double-buffered block + loaded value
            + 2 * w_tile
            + slab + acc
            + 2 * out_tile)             # double-buffered output


def _pick_block_rows(B, H2, W2, Cin4, C4, budget_bytes):
    """Largest legal output-row block fitting the budget, keeping >=4 blocks
    total when possible (v7x megacore occupancy)."""
    legal = [d for d in range(1, H2 + 1)
             if H2 % d == 0 and ((d * W2) % 8 == 0 or d == H2)]
    fitting = [d for d in legal
               if _step_vmem_bytes(d, W2, Cin4, C4) <= budget_bytes]
    cands = fitting if fitting else [min(legal)]
    for min_blocks in (4, 2, 1):
        ok = [d for d in cands if B * (H2 // d) >= min_blocks]
        if ok:
            return max(ok)
    return max(cands)


def _pick_group(Cin4):
    """Windows folded per dot: one K<=512 dot for small channels, otherwise
    per-shift dots with K = 4*Cin (>=256 on 256-deep MXUs)."""
    if 4 * Cin4 <= 512:
        return 4
    if 2 * Cin4 <= 512:
        return 2
    return 1


# ----------------------------- forward ---------------------------------------


def downsample_forward(x, weight, H, W, *, block_rows=None):
    """Forward of SSFNet Downsample.

    x:      (B, H*W, n_feat)            float32
    weight: (n_feat//2, n_feat, 3, 3)   PyTorch Conv2d weight (OIHW), no bias
    returns (B, (H//2)*(W//2), 2*n_feat) float32
    """
    B, L, Cin = x.shape
    assert L == H * W and H % 2 == 0 and W % 2 == 0
    Cout = weight.shape[0]
    assert weight.shape == (Cout, Cin, 3, 3)
    C4, Cin4 = 4 * Cout, 4 * Cin
    H2, W2 = H // 2, W // 2

    vmem_limit = _vmem_limit_bytes()
    if block_rows is None:
        TH2 = _pick_block_rows(B, H2, W2, Cin4, C4, budget_bytes=vmem_limit // 2)
    else:
        TH2 = block_rows
    assert H2 % TH2 == 0, (H2, TH2)
    assert (TH2 * W2) % 8 == 0 or TH2 == H2, (TH2, W2)
    R = H2 // TH2

    # b (h w) c -> NHWC bf16 -> zero-pad (conv padding 1) -> 2x2 parity planes
    # concatenated along channels -> overlapping row blocks (each carries its
    # own 1-row halo).  One wrapper-side XLA relayout pass over the input.
    xb = x.reshape(B, H, W, Cin).astype(jnp.bfloat16)
    x_pad = jnp.pad(xb, ((0, 0), (1, 1), (1, 1), (0, 0)))
    x_par = jnp.concatenate(
        [x_pad[:, py::2, px::2, :] for py in range(2) for px in range(2)],
        axis=-1)                                        # (B, H2+1, W2+1, 4Cin)
    x_blk = jnp.stack(
        [x_par[:, r * TH2:r * TH2 + TH2 + 1] for r in range(R)],
        axis=1)                                         # (B, R, TH2+1, W2+1, 4Cin)

    w_big = _build_fused_weight(weight).astype(jnp.bfloat16)   # (16*Cin, C4)

    group = _pick_group(Cin4)
    kernel = functools.partial(_fused_kernel, group=group)

    out = pl.pallas_call(
        kernel,
        out_shape=jax.ShapeDtypeStruct((B, H2 * W2, C4), x.dtype),
        grid_spec=pltpu.PrefetchScalarGridSpec(
            num_scalar_prefetch=0,
            grid=(B, R),
            in_specs=[
                pl.BlockSpec((None, None, TH2 + 1, W2 + 1, Cin4),
                             lambda b, r: (b, r, 0, 0, 0)),
                pl.BlockSpec((16 * Cin, C4), lambda b, r: (0, 0)),
            ],
            out_specs=pl.BlockSpec((1, TH2 * W2, C4), lambda b, r: (b, r, 0)),
        ),
        compiler_params=pltpu.CompilerParams(
            dimension_semantics=("parallel", "parallel"),
            vmem_limit_bytes=vmem_limit),
    )(x_blk, w_big)

    return out  # already (B, (H/2)*(W/2), 2*n_feat)


# ----------------------------- reference & test ------------------------------


def _reference(x, weight, H, W):
    """Pure-JAX f32 reference: lax conv + explicit PixelUnshuffle(2)."""
    B, L, Cin = x.shape
    Cout = weight.shape[0]
    conv = jax.lax.conv_general_dilated(
        x.reshape(B, H, W, Cin), jnp.transpose(weight, (2, 3, 1, 0)),  # HWIO
        window_strides=(1, 1), padding="SAME",
        dimension_numbers=("NHWC", "HWIO", "NHWC"))
    H2, W2 = H // 2, W // 2
    y = conv.reshape(B, H2, 2, W2, 2, Cout)
    y = jnp.transpose(y, (0, 1, 3, 5, 2, 4))
    return y.reshape(B, H2 * W2, Cout * 4)


if __name__ == "__main__":
    B, n_feat, H, W = 2, 4, 16, 16
    key = jax.random.PRNGKey(0)
    kx, kw = jax.random.split(key)

    x = jax.random.normal(kx, (B, H * W, n_feat), dtype=jnp.float32)
    # Conv2d(n_feat, n_feat//2, 3, bias=False) weight, OIHW layout.
    weight = jax.random.normal(kw, (n_feat // 2, n_feat, 3, 3),
                               dtype=jnp.float32) * 0.1

    ref = _reference(x, weight, H, W)
    expected_shape = (B, (H // 2) * (W // 2), 2 * n_feat)

    # Auto-picked row block (multi-block via megacore rule) and a forced
    # block_rows=2 tiling so the inter-block halo path is exercised twice.
    for block_rows in (None, 2):
        fwd = jax.jit(functools.partial(downsample_forward, H=H, W=W,
                                        block_rows=block_rows))
        out = fwd(x, weight)
        jax.block_until_ready(out)
        assert out.shape == expected_shape, (out.shape, expected_shape)
        # bf16 operands / f32 accumulation -> loosened tolerance.
        err = float(jnp.max(jnp.abs(out - ref)))
        assert err < 5e-2, err

    print("KERNEL_OK")
</pallas_src>

<mosaic_0001>
module attributes {stable_mosaic.version = 11 : i64} {
  func.func @_fused_kernel(%arg0: i32, %arg1: i32, %arg2: memref<1x1x5x9x16xbf16, #tpu.memory_space<vmem>>, %arg3: memref<64x8xbf16, #tpu.memory_space<vmem>>, %arg4: memref<1x32x8xf32, #tpu.memory_space<vmem>>) attributes {dimension_semantics = [#tpu.dimension_semantics<parallel>, #tpu.dimension_semantics<parallel>], iteration_bounds = array<i64: 2, 2>, scalar_prefetch = 0 : i64, scratch_operands = 0 : i64, tpu.core_type = #tpu.core_type<tc>, window_params = [{transform_indices = @transform_0, window_bounds = array<i64: 1, 1, 5, 9, 16>}, {pipeline_mode = #tpu.pipeline_mode<synchronous>, transform_indices = @transform_1, window_bounds = array<i64: 64, 8>}, {transform_indices = @transform_2, window_bounds = array<i64: 1, 32, 8>}]} {
    %c0 = arith.constant 0 : index
    %c0_0 = arith.constant 0 : index
    %c0_1 = arith.constant 0 : index
    %c0_2 = arith.constant 0 : index
    %c0_3 = arith.constant 0 : index
    %0 = vector.load %arg2[%c0, %c0_0, %c0_1, %c0_2, %c0_3] : memref<1x1x5x9x16xbf16, #tpu.memory_space<vmem>>, vector<1x1x5x9x16xbf16>
    %1 = vector.shape_cast %0 : vector<1x1x5x9x16xbf16> to vector<5x9x16xbf16>
    %2 = vector.extract_strided_slice %1 {offsets = [0, 0, 0], sizes = [4, 8, 16], strides = [1, 1, 1]} : vector<5x9x16xbf16> to vector<4x8x16xbf16>
    %3 = vector.extract_strided_slice %1 {offsets = [0, 1, 0], sizes = [4, 8, 16], strides = [1, 1, 1]} : vector<5x9x16xbf16> to vector<4x8x16xbf16>
    %4 = vector.extract_strided_slice %1 {offsets = [1, 0, 0], sizes = [4, 8, 16], strides = [1, 1, 1]} : vector<5x9x16xbf16> to vector<4x8x16xbf16>
    %5 = vector.extract_strided_slice %1 {offsets = [1, 1, 0], sizes = [4, 8, 16], strides = [1, 1, 1]} : vector<5x9x16xbf16> to vector<4x8x16xbf16>
    %6 = tpu.concatenate %2, %3, %4, %5 in 2 : vector<4x8x16xbf16>, vector<4x8x16xbf16>, vector<4x8x16xbf16>, vector<4x8x16xbf16> -> vector<4x8x64xbf16>
    %7 = vector.shape_cast %6 : vector<4x8x64xbf16> to vector<32x64xbf16>
    %c0_4 = arith.constant 0 : index
    %c0_5 = arith.constant 0 : index
    %8 = vector.load %arg3[%c0_4, %c0_5] : memref<64x8xbf16, #tpu.memory_space<vmem>>, vector<64x8xbf16>
    %cst = arith.constant dense<0.000000e+00> : vector<32x8xf32>
    %9 = tpu.matmul %7, %8, %cst {dimension_numbers = #tpu.dot_dimension_numbers<[1], [0], [0], [1], [0, 0, 1, 1], [], []>} : vector<32x64xbf16>, vector<64x8xbf16>, vector<32x8xf32> -> vector<32x8xf32>
    %10 = vector.shape_cast %9 : vector<32x8xf32> to vector<1x32x8xf32>
    %c0_6 = arith.constant 0 : index
    %c0_7 = arith.constant 0 : index
    %c0_8 = arith.constant 0 : index
    %11 = vector.load %arg4[%c0_6, %c0_7, %c0_8] : memref<1x32x8xf32, #tpu.memory_space<vmem>>, vector<1x32x8xf32>
    tpu.vector_store %arg4[%c0_6, %c0_7, %c0_8], %10 {strides = array<i32>} : memref<1x32x8xf32, #tpu.memory_space<vmem>>, vector<1x32x8xf32>,
    return
  }
  func.func @transform_0(%arg0: i32, %arg1: i32) -> (i32, i32, i32, i32, i32) {
    %c0_i32 = arith.constant 0 : i32
    %c0_i32_0 = arith.constant 0 : i32
    %c0_i32_1 = arith.constant 0 : i32
    %c0_i32_2 = arith.constant 0 : i32
    return %arg0, %arg1, %c0_i32, %c0_i32_0, %c0_i32_1 : i32, i32, i32, i32, i32
  }
  func.func @transform_1(%arg0: i32, %arg1: i32) -> (i32, i32) {
    %c0_i32 = arith.constant 0 : i32
    %c0_i32_0 = arith.constant 0 : i32
    %c0_i32_1 = arith.constant 0 : i32
    return %c0_i32, %c0_i32_0 : i32, i32
  }
  func.func @transform_2(%arg0: i32, %arg1: i32) -> (i32, i32, i32) {
    %c0_i32 = arith.constant 0 : i32
    %c0_i32_0 = arith.constant 0 : i32
    return %arg0, %arg1, %c0_i32 : i32, i32, i32
  }
}

</mosaic_0001>

<bundles_post_ra>
// kernel: downsample_forward.1
= control target key start
LH: loop header
LB: loop body
LE: loop exit
PB: predicated region body
PF: predicated region fallthrough
CT: control target
= control target key end

     0   :  { %s1163_s0 = inlined_call_operand.hbm [shape: bf16[2,2,5,9,16], index: 0, kind: input, shape index: {}]   ;;  %s1164_s1 = inlined_call_operand.hbm [shape: bf16[64,8], index: 1, kind: input, shape index: {}]   ;;  %s1165_s2 = inlined_call_operand.hbm [shape: f32[2,64,8], index: 2, kind: output, shape index: {}]  }
   0x1   :  { %1174 = sst [smem:[#allocation13_spill]] %s1164_s1 }
   0x2   :  { %7 = vsyncpa [#allocation3], 0 }
   0x3   :  { %9 = vsyncpa [#allocation3 + $0x1], 0 }
   0x4   :  { %10 = vsyncpa [#allocation6], 0 }
   0x5   :  { %11 = vsyncpa [#allocation4], 0 }
   0x6   :  { %13 = vsyncpa [#allocation4 + $0x1], 0  ;;  %s895_s9 = smov 0   ;;  %s897_s10 = smov 0  }
   0x7   :  { %s899_s11 = smov 0   ;;  %s901_s12 = smov 0  }
   0x8   :  { %s903_s13 = smov 0   ;;  %s905_s14 = smov 0  }
   0x9   :  { %s907_s15 = smov 0   ;;  %s909_s16 = smov 0  }
   0xa LB: > { %s545_s17 = sadd.s32 4294967295, %s868_s16   ;;  %s546_s18 = sadd.s32 4294967294, %s868_s16   ;;  %s868_s16 = sphi %s909_s16, %s19_s16   ;;  %s864_s15 = sphi %s907_s15, %s1201_s15   ;;  %s860_s14 = sphi %s905_s14, %s1200_s14   ;;  %s856_s13 = sphi %s903_s13, %s1199_s13   ;;  %s852_s12 = sphi %s901_s12, %s1198_s12   ;;  %s848_s11 = sphi %s899_s11, %s1197_s11   ;;  %s844_s10 = sphi %s897_s10, %s1196_s10   ;;  %s840_s9 = sphi %s895_s9, %s1195_s9  }
   0xb   : > { %p53_p0 = scmp.ne.s32.totalorder %s844_s10, %s840_s9  ;;  %p939_p1 = scmp.eq.s32.totalorder %s545_s17, 0 }
   0xc   : > { %p943_p2 = scmp.eq.s32.totalorder %s545_s17, 3  ;;  %p106_p3 = scmp.eq.s32.totalorder %s546_s18, 3 }
   0xd   : > { %s1175_s19 = scalar_select %p939_p1, 1, 0 }
   0xe   : > { %s1176_s20 = scalar_select %p943_p2, 1, 0 }
   0xf   : > { %p949_p4 = por %p939_p1, %p53_p0  ;;  %p547_p5 = scmp.ge.s32.totalorder %s868_s16, 1 }
  0x10   : > { %p954_p6 = por %p106_p3, %p53_p0  ;;  %p113_p7 = scmp.lt.s32.totalorder %s868_s16, 5 }
  0x11   : > { %s1177_s21 = scalar_select %p949_p4, 1, 0 }
  0x12   : > { %s1178_s22 = scalar_select %p954_p6, 1, 0 }
  0x13   : > { %p959_p8 = pnand %p547_p5, %p113_p7  ;;  %s870_s24 = smov [#allocation5]  }
  0x14   : > { %s125_s25 = sshll.u32 %s870_s24, 4  ;;  %s1181_s1 = sld [smem:[#allocation13_spill]]  ;;  %s126_s25 = int_to_ptr.vmem [resolvable:$true] %s125_s25 }
  0x15   : > { %s1179_s23 = scalar_select %p959_p8, 1, 0 }
  0x16   : > { %p607_p9 = pneg %p959_p8 }
  0x18   : > { %p967_p10 = pnand %p607_p9, %p939_p1 }
  0x1a   : > { %s708_s29 = scalar_lea.hbm %s1181_s1, 512  ;;  %p710_p12 = pneg %p967_p10 }
  0x1b   : > { %p709_p11 = scmp.ne.s32.totalorder %s1181_s1, %s708_s29  ;;  %p715_p3 = scmp.lt.u32.totalorder %s708_s29, %s1181_s1 }
  0x1d   : > { %p711_p13 = pnand %p710_p12, %p709_p11 }
  0x1f   : > { %p712_p0 = pneg %p711_p13 }
  0x21   : > { %p717_p5 = pnand %p715_p3, %p712_p0 }
  0x23   : > { %720 = shalt.err (!%p717_p5)
}
  0x24   : > { %s721_s6 = scalar_lea.vmem %s126_s25, 512  ;;  %p729_p1 = scmp.lt.s32.totalorder %s126_s25, %s126_s25 }
  0x25   : > { %p722_p7 = scmp.ne.s32.totalorder %s126_s25, %s721_s6  ;;  %p730_p4 = scmp.lt.s32.totalorder %s721_s6, %s721_s6 }
  0x27   : > { %p724_p9 = pnand %p722_p7, %p710_p12  ;;  %p731_p8 = por %p730_p4, %p729_p1 }
  0x29   : > { %p725_p6 = pneg %p724_p9 }
  0x2b   : > { %p732_p2 = pnand %p731_p8, %p725_p6 }
  0x2d   : > { %735 = shalt.err (!%p732_p2)
}
  0x2e   : > { %s1170_s7 = smov 64   ;;  %s1171_s8 = smov 4  }
  0x2f   : > { %610 = dma.hbm_to_vmem [thread:$0]  (!%p967_p10), %s1181_s1, 512, %s126_s25, [#allocation6], %s1170_s7, %s1170_s7, %s1171_s8  }
  0x30   : > { %s28_s24 = sadd.s32 1, %s860_s14  ;;  %s31_s27 = sadd.s32 1, %s864_s15 }
  0x31   : > { %p29_p1 = scmp.ge.s32.totalorder %s28_s24, 2  ;;  %s40_s28 = sadd.s32 1, %s848_s11 }
  0x32   : > { %p47_p2 = scmp.ne.s32.totalorder %s848_s11, %s844_s10  ;;  %p48_p4 = scmp.eq.s32.totalorder %s868_s16, 0 }
  0x33   : > { %s1203_s24 = smov (%p29_p1, %s28_s24), 0  ;;  %s1205_s27 = smov (!%p29_p1, %s31_s27), %s864_s15 }
  0x34   : > { %1182 = sst [smem:[#allocation11_spill]] %s1203_s24  ;;  %s36_s26 = ssub.s32 %s860_s14, %s1203_s24 }
  0x35   : > { %p33_p6 = scmp.ge.s32.totalorder %s1205_s27, 2  ;;  %p1183_p8 = scmp.ne.s32.totalorder %s1176_s20, 0 }
  0x36   : > { %p49_p10 = por %p48_p4, %p47_p2  ;;  %p620_p12 = scmp.lt.s32.totalorder %s868_s16, 4 }
  0x37   : > { %p1003_p11 = por %p1183_p8, %p47_p2  ;;  %s1207_s27 = smov (%p33_p6, %s1205_s27), 0 }
  0x38   : > { %1185 = sst [smem:[#allocation12_spill]] %s1207_s27  ;;  %s139_s25 = sand.u32 1, %s848_s11  }
  0x39   : > { %s596_s30 = smul.u32 10, %s860_s14  ;;  %s35_s3 = ssub.s32 %s864_s15, %s1207_s27 }
  0x3a   : > { %s37_s4 = sor.u32 %s36_s26, %s35_s3  ;;  %s595_s5 = smul.u32 40, %s139_s25 }
  0x3b   : > { %p38_p13 = scmp.eq.s32.totalorder %s37_s4, 0  ;;  %s597_s6 = smul.u32 20, %s864_s15 }
  0x3c   : > { %p1015_p0 = pnand %p620_p12, %p49_p10  ;;  %s143_s7 = scalar_lea.vmem [#allocation2], %s595_s5 }
  0x3d   : > { %s1020_s20 = scalar_select %p38_p13, %s848_s11, %s40_s28  }
  0x3e   : > { %s149_s18 = sadd.s32 %s597_s6, %s596_s30  ;;  %s152_s8 = sshll.u32 %s143_s7, 4  ;;  %s1022_s8 = int_to_ptr.vmem [resolvable:$true] %s152_s8 }
  0x3f   : > { %s550_s1 = sshll.u32 %s149_s18, 6  ;;  %s1029_s3 = scalar_lea.sflag [#allocation3], %s139_s25 }
  0x40   : > { %s1027_s26 = scalar_lea.hbm %s1163_s0, %s550_s1  ;;  %p738_p5 = pneg %p1015_p0 }
  0x41   : > { %s736_s4 = scalar_lea.hbm %s1027_s26, 640  ;;  %s741_s24 = scalar_lea.hbm %s1163_s0, 2560 }
  0x42   : > { %p737_p3 = scmp.ne.s32.totalorder %s1027_s26, %s736_s4  ;;  %p742_p1 = scmp.lt.u32.totalorder %s1027_s26, %s1163_s0 }
  0x43   : > { %p743_p2 = scmp.lt.u32.totalorder %s741_s24, %s736_s4  ;;  %p745_p6 = scmp.lt.u32.totalorder %s736_s4, %s1027_s26 }
  0x44   : > { %p739_p7 = pnand %p738_p5, %p737_p3 }
  0x45   : > { %p744_p4 = por %p743_p2, %p742_p1 }
  0x46   : > { %p740_p9 = pneg %p739_p7 }
  0x47   : > { %p746_p8 = por %p745_p6, %p744_p4 }
  0x49   : > { %p747_p10 = pnand %p746_p8, %p740_p9 }
  0x4b   : > { %750 = shalt.err (!%p747_p10)
}
  0x4c   : > { %s751_s25 = scalar_lea.vmem %s1022_s8, 640  ;;  %s873_s30 = smov [#allocation2]  }
  0x4d   : > { %p752_p12 = scmp.ne.s32.totalorder %s1022_s8, %s751_s25  ;;  %s756_s5 = sshll.u32 %s873_s30, 4  ;;  %s757_s5 = int_to_ptr.vmem [resolvable:$false] %s756_s5 }
  0x4e   : > { %s758_s6 = scalar_lea.vmem %s757_s5, 1280  ;;  %p759_p7 = scmp.lt.s32.totalorder %s1022_s8, %s757_s5 }
  0x4f   : > { %p754_p13 = pnand %p752_p12, %p738_p5  ;;  %p760_p1 = scmp.lt.s32.totalorder %s758_s6, %s751_s25 }
  0x51   : > { %p755_p3 = pneg %p754_p13  ;;  %p761_p2 = por %p760_p1, %p759_p7 }
  0x53   : > { %p762_p4 = pnand %p761_p2, %p755_p3 }
  0x55   : > { %765 = shalt.err (!%p762_p4)
}
  0x56   : > { %s1187_s18 = smov 4   ;;  %s1188_s4 = smov 64  }
  0x57   : > { %614 = dma.hbm_to_vmem [thread:$0]  (!%p1015_p0), %s1027_s26, 640, %s1022_s8, %s1029_s3, %s1188_s4, %s1188_s4, %s1187_s18  }
  0x58   : > { %p1189_p5 = scmp.ne.s32.totalorder %s1179_s23, 0 }
  0x59   : > { %s1063_s7 = sand.u32 (!%p1189_p5), 1, %s844_s10   ;;  %p1190_p9 = scmp.ne.s32.totalorder (!%p1189_p5), %s1177_s21, 0 }
  0x5a   : > { %164 = sbr.rel (%p1189_p5) target bundleno = 473 (0x1d9), region = 28  ;;  %s167_s24 = scalar_lea.sflag (!%p1189_p5), [#allocation3], %s1063_s7 }
  0x5b   : > { %s598_s28 = smul.u32 (!%p1189_p5), 40, %s1063_s7 }
  0x5d   : > { %s170_s1 = scalar_lea.vmem (!%p1189_p5), [#allocation2], %s598_s28 }
  0x61   : > { %827 = dma.done.wait (%p1190_p9), %s167_s24, 640  }
  0x62   : > { %829 = vsyncadd (%p1190_p9), %s167_s24, 4294966656  ;;  %p1191_p6 = scmp.ne.s32.totalorder %s1175_s19, 0 }
  0x64   : > { %831 = dma.done.wait (%p1191_p6), [#allocation6], 512  }
  0x65   : > { %833 = vsyncadd (%p1191_p6), [#allocation6], 4294966784  ;;  %v1075_v0 = vld [vmem:[%s170_s1 + $0x10] sm:$0xf]  ;;  %v202_v1 = vld [vmem:[%s170_s1 + $0x14] sm:$0x1] }
  0x66   : > { %v1077_v2 = vld [vmem:[%s170_s1 + $0x8] sm:$0xf]  ;;  %v559_v3 = vcombine.low %v1075_v0, %v1075_v0  ;;  %v556_v4 = vcombine.low %v1075_v0, %v202_v1  ;;  %v200_v5 = vld [vmem:[%s170_s1 + $0xc] sm:$0x1]  ;;  %v205_v7 = vld [vmem:[%s170_s1 + $0x20] sm:$0xf] }
  0x67   : > { %v558_v6 = vcombine.low %v1077_v2, %v1077_v2  ;;  %v555_v8 = vcombine.low %v1077_v2, %v200_v5  ;;  %v561_v9 = vcombine.low %v205_v7, %v205_v7  ;;  %v1085_v10 = vld [vmem:[%s170_s1 + $0x18] sm:$0xf]  ;;  %v1087_v11 = vld [vmem:[%s170_s1] sm:$0xf]  ;;  %v198_v12 = vld [vmem:[%s170_s1 + $0x4] sm:$0x1] }
  0x68   : > { %s874_s19 = smov 32   ;;  %v560_v13 = vcombine.low %v1085_v10, %v1085_v10  ;;  %v242_v14 = vshrl.u32 %v556_v4, 16  ;;  %v244_v15 = vshll.u32 %v556_v4, 16  ;;  %v554_v16 = vcombine.low %v1087_v11, %v198_v12  ;;  %v204_v17 = vld [vmem:[%s170_s1 + $0x1c] sm:$0x1]  ;;  %v704_v21 = vld [vmem:[#allocation5] sm:$0xff]  }
  0x69   : > { %271 = vrot.lane.b32.xlu1 %v559_v3, %s874_s19  ;;  %269 = vrot.lane.b32.xlu0 %v558_v6, %s874_s19  ;;  %v206_v18 = vld [vmem:[%s170_s1 + $0x24] sm:$0x1]  ;;  %v557_v19 = vcombine.low %v1085_v10, %v204_v17  ;;  %v237_v20 = vshll.u32 %v555_v8, 16  ;;  %v235_v27 = vshrl.u32 %v555_v8, 16  ;;  %v705_v28 = vld [vmem:[#allocation5 + $0x8] sm:$0xff]   ;;  %s875_s21 = smov 16  }
  0x6a   : > { %v246_v22 = vrot.slane %v244_v15, 1  ;;  %v228_v23 = vshrl.u32 %v554_v16, 16  ;;  %v230_v24 = vshll.u32 %v554_v16, 16  ;;  %583 = vmatprep.subr.bf16.mxu0 %v704_v21  ;;  %v562_v29 = vcombine.low %v205_v7, %v206_v18  ;;  %v706_v35 = vld [vmem:[#allocation5 + $0x10] sm:$0xff]   ;;  %v707_v39 = vld [vmem:[#allocation5 + $0x18] sm:$0xff]   ;;  %s876_s23 = smov 48  }
  0x6b   : > { %v249_v25 = vshrl.u32 %v557_v19, 16  ;;  %v251_v26 = vshll.u32 %v557_v19, 16  ;;  %v239_v32 = vrot.slane %v237_v20, 1  ;;  %584 = vmatpush3.bf16.msra.mxu0 %v704_v21  ;;  %vm295_vm0 = vcmask 130048   ;;  %s572_s8 = sshll.u32 %s852_s12, 2  ;;  %s573_s17 = sshll.u32 %s856_s13, 3 }
  0x6c   : > { %v247_v30 = vor.u32 %v246_v22, %v242_v14  ;;  %v232_v31 = vrot.slane %v230_v24, 1  ;;  %585 = vmatprep.subr.bf16.mxu0 %v705_v28  ;;  %v283_v38 = vshll.u32 %v562_v29, 16  ;;  %v281_v40 = vshrl.u32 %v562_v29, 16  ;;  %s553_s26 = sshll.u32 %s1063_s7, 5  ;;  %s442_s3 = sadd.s32 %s573_s17, %s572_s8 }
  0x6d   : > { %275 = vrot.lane.b32.xlu1 %v561_v9, %s874_s19  ;;  %273 = vrot.lane.b32.xlu0 %v560_v13, %s874_s19  ;;  %v253_v33 = vrot.slane %v251_v26, 1  ;;  %v240_v37 = vor.u32 %v239_v32, %v235_v27  ;;  %vm308_vm1 = vcmask 261120   ;;  %vm317_vm2 = vcmask 392192   ;;  %s194_s27 = scalar_lea.vmem [#allocation7], %s553_s26  ;;  %s574_s30 = sshll.u32 %s442_s3, 7 }
  0x6e   : > { %v233_v34 = vor.u32 %v232_v31, %v228_v23  ;;  %v285_v41 = vrot.slane %v283_v38, 1  ;;  %vm368_vm3 = vcmask 523264   ;;  %s445_s25 = sshll.u32 %s194_s27, 4  ;;  %vm424_vm4 = vcmask 64512   ;;  %s1109_s12 = scalar_lea.hbm %s1165_s2, %s574_s30  ;;  %s1104_s25 = int_to_ptr.vmem [resolvable:$true] %s445_s25 }
  0x6f   : > { %v254_v36 = vor.u32 %v253_v33, %v249_v25  ;;  %586 = vmatpush3.bf16.msra.mxu0 %v705_v28  ;;  %s430_s13 = scalar_lea.sflag [#allocation4], %s1063_s7  ;;  %s766_s18 = scalar_lea.vmem %s1104_s25, 512 }
  0x70   : > { %587 = vmatprep.subr.bf16.mxu0 %v706_v35  ;;  %v286_v42 = vor.u32 %v285_v41, %v281_v40  ;;  %p767_p0 = scmp.ne.s32.totalorder %s1104_s25, %s766_s18  ;;  %s877_s4 = smov [#allocation7]  }
  0x71   : > { %259 = vrot.lane.b32.xlu1 %v247_v30, %s875_s21  ;;  %255 = vrot.lane.b32.xlu0 %v233_v34, %s875_s21  ;;  %s770_s28 = sshll.u32 %s877_s4, 4  ;;  %s771_s28 = int_to_ptr.vmem [resolvable:$false] %s770_s28 }
  0x72   : > { %p768_p8 = pnand %p767_p0, %p1003_p11  ;;  %s772_s24 = scalar_lea.vmem %s771_s28, 1024 }
  0x73   : > { %588 = vmatpush3.bf16.msra.mxu0 %v706_v35  ;;  %p773_p12 = scmp.lt.s32.totalorder %s1104_s25, %s771_s28  ;;  %p774_p13 = scmp.lt.s32.totalorder %s772_s24, %s766_s18 }
  0x74   : > { %589 = vmatprep.subr.bf16.mxu0 %v707_v39  ;;  %p769_p10 = pneg %p768_p8 }
  0x75   : > { %261 = vrot.lane.b32.xlu1 %v254_v36, %s875_s21  ;;  %257 = vrot.lane.b32.xlu0 %v240_v37, %s875_s21  ;;  %p775_p3 = por %p774_p13, %p773_p12 }
  0x77   : > { %590 = vmatpush3.bf16.msra.mxu0 %v707_v39  ;;  %p776_p7 = pnand %p775_p3, %p769_p10 }
  0x79   : > { %289 = vrot.lane.b32.xlu1 %v247_v30, %s876_s23  ;;  %287 = vrot.lane.b32.xlu0 %v240_v37, %s876_s23 }
  0x7d   : > { %293 = vrot.lane.b32.xlu1 %v286_v42, %s876_s23  ;;  %291 = vrot.lane.b32.xlu0 %v254_v36, %s876_s23 }
  0xdb   : > { %v272_v43 = vpop.permute.xlu1 %271  ;;  %v270_v44 = vpop.permute.xlu0 %269 }
  0xdf   : > { %v276_v45 = vpop.permute.xlu1 %275  ;;  %v274_v46 = vpop.permute.xlu0 %273 }
  0xe3   : > { %v260_v47 = vpop.permute.xlu1 %259  ;;  %v256_v48 = vpop.permute.xlu0 %255 }
  0xe4   : > { %v298_v51 = vsel %vm295_vm0, %v1087_v11, %v256_v48  ;;  %v304_v57 = vsel %vm295_vm0, %v1075_v0, %v260_v47 }
  0xe5   : > { %v310_v55 = vsel %vm308_vm1, %v298_v51, %v270_v44  ;;  %v314_v1 = vsel %vm308_vm1, %v304_v57, %v274_v46 }
  0xe7   : > { %v262_v49 = vpop.permute.xlu1 %261  ;;  %v258_v50 = vpop.permute.xlu0 %257 }
  0xe8   : > { %v301_v52 = vsel %vm295_vm0, %v1077_v2, %v258_v50  ;;  %v307_v58 = vsel %vm295_vm0, %v1085_v10, %v262_v49 }
  0xe9   : > { %v312_v54 = vsel %vm308_vm1, %v301_v52, %v272_v43  ;;  %v316_v62 = vsel %vm308_vm1, %v307_v58, %v276_v45 }
  0xeb   : > { %v290_v53 = vpop.permute.xlu1 %289  ;;  %v288_v56 = vpop.permute.xlu0 %287 }
  0xec   : > { %v321_v59 = vsel %vm317_vm2, %v312_v54, %v290_v53  ;;  %v319_v60 = vsel %vm317_vm2, %v310_v55, %v288_v56 }
  0xed   : > { %v563_v61 = vcombine.low %v319_v60, %v321_v59 }
  0xef   : > { %v294_v63 = vpop.permute.xlu1 %293  ;;  %591 = vmatprep.mubr.msk.bf16.mxu0 %vm368_vm3, %v563_v61  ;;  %v292_v2 = vpop.permute.xlu0 %291 }
  0xf0   : > { %v325_v3 = vsel %vm317_vm2, %v316_v62, %v294_v63  ;;  %v323_v4 = vsel %vm317_vm2, %v314_v1, %v292_v2 }
  0xf1   : > { %v564_v5 = vcombine.low %v323_v4, %v325_v3 }
  0xf3   : > { %592 = vmatmul.mubr.msk.bf16.vlgmr.msra.gmra.mrb[0].mxu0 %vm368_vm3, %v564_v5 }
 0x1c6   : > { %v593_v0 = vpop.f32.mrb[0].mxu0 }
 0x1c7   : > { %427 = vst.msk [vmem:[%s194_s27 + $0x10] sm:$0xff] %vm424_vm4, %v593_v0  ;;  %v409_v6 = vpop.f32.mrb[1].mxu0 }
 0x1c8   : > { %425 = vst.msk [vmem:[%s194_s27] sm:$0xff] %vm424_vm4, %v409_v6  ;;  %v594_v7 = vpop.f32.mrb[2].mxu0 }
 0x1c9   : > { %428 = vst.msk [vmem:[%s194_s27 + $0x18] sm:$0xff] %vm424_vm4, %v594_v7  ;;  %v412_v8 = vpop.f32.mrb[3].mxu0 }
 0x1ca   : > { %426 = vst.msk [vmem:[%s194_s27 + $0x8] sm:$0xff] %vm424_vm4, %v412_v8 }
 0x1cb   : > { %779 = shalt.err (!%p776_p7)
}
 0x1cc   : > { %s780_s1 = scalar_lea.hbm %s1109_s12, 512  ;;  %s784_s23 = scalar_lea.hbm %s1165_s2, 2048 }
 0x1cd   : > { %p781_p1 = scmp.ne.s32.totalorder %s1109_s12, %s780_s1  ;;  %p785_p5 = scmp.lt.u32.totalorder %s1109_s12, %s1165_s2 }
 0x1ce   : > { %p786_p9 = scmp.lt.u32.totalorder %s784_s23, %s780_s1  ;;  %p788_p0 = scmp.lt.u32.totalorder %s780_s1, %s1109_s12 }
 0x1cf   : > { %p782_p2 = pnand %p781_p1, %p1003_p11 }
 0x1d0   : > { %p787_p6 = por %p786_p9, %p785_p5 }
 0x1d1   : > { %p783_p4 = pneg %p782_p2 }
 0x1d2   : > { %p789_p8 = por %p788_p0, %p787_p6 }
 0x1d4   : > { %p790_p10 = pnand %p789_p8, %p783_p4 }
 0x1d6   : > { %793 = shalt.err (!%p790_p10)
}
 0x1d7   : > { %s878_s26 = smov 128   ;;  %s879_s3 = smov 8  }
 0x1d8   : > { %605 = dma.vmem_to_hbm [thread:$0]  (%p1003_p11), %s1104_s25, 512, %s1109_s12, %s430_s13, %s878_s26, %s878_s26, %s879_s3  }
 0x1d9 PF: > { %p622_p12 = scmp.ge.s32.totalorder %s868_s16, 2  ;;  %s460_s27 = sand.u32 1, %s840_s9  }
 0x1da   : > { %p1192_p13 = scmp.ne.s32.totalorder %s1178_s22, 0  ;;  %s461_s30 = scalar_lea.sflag [#allocation4], %s460_s27 }
 0x1dc   : > { %p616_p3 = pnand %p622_p12, %p1192_p13 }
 0x1de   : > { %835 = dma.done.wait (!%p616_p3), %s461_s30, 512  }
 0x1df   : > { %837 = vsyncadd (!%p616_p3), %s461_s30, 4294966784  ;;  %s19_s16 = sadd.s32 1, %s868_s16   ;;  %s1193_s29 = sld [smem:[#allocation11_spill]] }
 0x1e0   : > { %p16_p7 = scmp.ge.s32.totalorder %s19_s16, 6   ;;  %s1194_s7 = sld [smem:[#allocation12_spill]] }
 0x1e1   : > { %s1195_s9 = smov %s844_s10  ;;  %s1196_s10 = smov %s848_s11 }
 0x1e2   : > { %s1197_s11 = smov %s1020_s20  ;;  %s1198_s12 = smov %s860_s14 }
 0x1e3   : > { %s1199_s13 = smov %s864_s15  ;;  %18 = sbr.rel (!%p16_p7) target bundleno = 10 (0xa), region = 77 }
 0x1e5   : > { %s1200_s14 = smov %s1193_s29 }
 0x1e6   : > { %s1201_s15 = smov %s1194_s7 }
 0x1ea   :  { %466 = vsyncpa [#allocation3], 1 }
 0x1eb   :  { %468 = vsyncpa [#allocation3 + $0x1], 1 }
 0x1ec   :  { %469 = vsyncpa [#allocation6], 1 }
 0x1ed   :  { %470 = vsyncpa [#allocation4], 1 }
 0x1ee   :  { %472 = vsyncpa [#allocation4 + $0x1], 1 }

</bundles_post_ra>
